<compile_context>
chip_gen: v7x
topology: tpu7x:2x2x1
jax: 0.10.0
libtpu: 0.0.40
codegen_flags: <defaults>
</compile_context>

<pallas_src>
import jax
import jax.numpy as jnp
from jax.experimental import pallas as pl
from jax.experimental.pallas import tpu as pltpu


def _round_up(x: int, m: int) -> int:
    return ((x + m - 1) // m) * m


def _vmem_capacity_bytes() -> int:
    """Physical per-core VMEM (128 MiB on v5e/v6e, 64 MiB on v7x)."""
    try:
        cap = int(pltpu.get_tpu_info().vmem_capacity_bytes)
        if cap > 0:
            return cap
    except Exception:
        pass
    return 64 << 20  # conservative fallback (safe on every generation)


def _tk_candidates(tk0: int):
    """Multiples of 128 that divide tk0 (tk0 is itself a multiple of 128)."""
    base = tk0 // 128
    divs = [d for d in range(1, base + 1) if base % d == 0]
    return sorted({d * 128 for d in divs}, reverse=True)


def _tn_candidates(n: int, tn_max: int, two_core_hint: bool):
    """N-tile candidates: multiples of 16, padded-row waste <= 25%."""
    n16 = _round_up(max(n, 1), 16)
    cands = []
    for c in (1024, 512, 256, 128, 64, 32, 16):
        if c > tn_max:
            continue
        n_pad = _round_up(n, c)
        if c != 16 and n_pad * 4 > n16 * 5:      # > 25% wasted rows
            continue
        cands.append(c)
    if 16 not in cands:
        cands.append(16)
    if two_core_hint and n16 >= 32:
        # v7x has 2 TensorCores: prefer tiles giving >=2 steps on the
        # 'parallel' axis so megacore sharding actually splits the work.
        pref = [c for c in cands if _round_up(n, c) // c >= 2]
        if pref:
            cands = pref + [c for c in cands if c not in pref]
    return cands


def _select_tiles(n, l_pad, tk0, n_out_pad, out_pad, x_bytes, out_bytes,
                  vmem_cap, tn_max=512):
    """Pick (tn, tk) and vmem_limit from the per-generation VMEM capacity."""
    vmem_limit = min(int(vmem_cap * 0.85), vmem_cap - (8 << 20))
    budget = max(vmem_limit - (4 << 20), 8 << 20)    # headroom for Mosaic scratch
    two_core_hint = vmem_cap <= (64 << 20)           # 64 MiB/TC => v7x-class part
    for tn in _tn_candidates(n, tn_max, two_core_hint):
        for tk in _tk_candidates(tk0):
            k_steps = l_pad // tk
            need = (2 * tn * tk * x_bytes             # x        (double-buffered)
                    + 2 * tk * n_out_pad * 2          # w1 bf16  (double-buffered)
                    + n_out_pad * out_pad * 2         # w2 bf16  (resident, 1 buf)
                    + (n_out_pad + out_pad) * 4       # biases   (resident, 1 buf)
                    + 2 * tn * out_pad * out_bytes    # output   (double-buffered)
                    + (tn * n_out_pad * 4 if k_steps > 1 else 0))   # f32 acc
            if need <= budget:
                return tn, tk, vmem_limit
    return 16, 128, vmem_limit


def _make_kernel(k_steps: int):
    """Fused backbone projection + fc head.

    Inner loop (K axis) is a pure bf16 MXU accumulate into an f32 scratch;
    bias adds and the small fc matmul run once in the epilogue, with h kept
    in f32.  When the whole L fits a single K tile the scratch round trip is
    skipped entirely.
    """
    if k_steps == 1:
        def kernel(x_ref, w1_ref, b1_ref, w2_ref, b2_ref, o_ref):
            h = jnp.dot(x_ref[...].astype(jnp.bfloat16), w1_ref[...],
                        preferred_element_type=jnp.float32) + b1_ref[...]
            out = jnp.dot(h, w2_ref[...].astype(jnp.float32),
                          preferred_element_type=jnp.float32) + b2_ref[...]
            o_ref[...] = out.astype(o_ref.dtype)
        return kernel

    def kernel(x_ref, w1_ref, b1_ref, w2_ref, b2_ref, o_ref, acc_ref):
        k = pl.program_id(1)

        @pl.when(k == 0)
        def _init():
            acc_ref[...] = jnp.zeros_like(acc_ref)

        acc_ref[...] += jnp.dot(x_ref[...].astype(jnp.bfloat16), w1_ref[...],
                                preferred_element_type=jnp.float32)

        @pl.when(k == pl.num_programs(1) - 1)
        def _epilogue():
            h = acc_ref[...] + b1_ref[...]                       # f32 epilogue
            out = jnp.dot(h, w2_ref[...].astype(jnp.float32),
                          preferred_element_type=jnp.float32) + b2_ref[...]
            o_ref[...] = out.astype(o_ref.dtype)

    return kernel


def _build_in_specs(tn, tk, n_out_pad, out_pad, single_buffer_resident):
    resident_kw = {}
    if single_buffer_resident:
        # Constant index maps -> second pipeline buffer is pure VMEM waste.
        resident_kw = dict(pipeline_mode=pl.Buffered(1))
    return [
        pl.BlockSpec((tn, tk), lambda i, k: (i, k)),                          # x
        pl.BlockSpec((tk, n_out_pad), lambda i, k: (k, 0)),                   # w1
        pl.BlockSpec((1, n_out_pad), lambda i, k: (0, 0), **resident_kw),     # b1
        pl.BlockSpec((n_out_pad, out_pad), lambda i, k: (0, 0), **resident_kw),  # w2
        pl.BlockSpec((1, out_pad), lambda i, k: (0, 0), **resident_kw),       # b2
    ]


def prepare_params(params, *, tk_max=2048):
    """One-time (hoisted) padding + bf16 cast of the weights.

    Called once at init time, NOT per forward call, so the per-call HBM
    traffic is just x in, output out, and one streamed read of the weights.
    """
    w1, b1, w2, b2 = params
    l, n_out = w1.shape
    out_neurons = w2.shape[1]
    n_out_pad = _round_up(n_out, 128)            # lane-dense accumulator
    out_pad = _round_up(out_neurons, 128)        # lane-dense output (no vst.msk)
    tk0 = min(_round_up(tk_max, 128), _round_up(l, 128))
    l_pad = _round_up(l, tk0)

    w1_p = jnp.zeros((l_pad, n_out_pad), jnp.bfloat16).at[:l, :n_out].set(
        w1.astype(jnp.bfloat16))
    b1_p = jnp.zeros((1, n_out_pad), jnp.float32).at[:, :n_out].set(
        jnp.asarray(b1, jnp.float32).reshape(1, -1))
    w2_p = jnp.zeros((n_out_pad, out_pad), jnp.bfloat16).at[:n_out, :out_neurons].set(
        w2.astype(jnp.bfloat16))
    b2_p = jnp.zeros((1, out_pad), jnp.float32).at[:, :out_neurons].set(
        jnp.asarray(b2, jnp.float32).reshape(1, -1))

    return dict(w1=w1_p, b1=b1_p, w2=w2_p, b2=b2_p,
                l=l, l_pad=l_pad, tk0=tk0,
                n_out=n_out, n_out_pad=n_out_pad,
                out_neurons=out_neurons, out_pad=out_pad)


def _fused_projection(x, p, *, tn_max=512, out_dtype=jnp.float32):
    """Run the fused (backbone + fc) kernel on a (N, L) activation."""
    n, l = x.shape
    assert l == p["l"], (l, p["l"])
    l_pad, tk0 = p["l_pad"], p["tk0"]
    n_out_pad, out_pad = p["n_out_pad"], p["out_pad"]
    out_bytes = jnp.dtype(out_dtype).itemsize

    vmem_cap = _vmem_capacity_bytes()
    # x_bytes=4 is a conservative (f32) upper bound for the budget.
    tn, tk, vmem_limit = _select_tiles(
        n, l_pad, tk0, n_out_pad, out_pad,
        x_bytes=4, out_bytes=out_bytes, vmem_cap=vmem_cap, tn_max=tn_max)

    n_pad = _round_up(n, tn)
    k_steps = l_pad // tk
    grid = (n_pad // tn, k_steps)

    # Stage x: pass through untouched when already tile-aligned (the bf16 cast
    # happens in-kernel); otherwise fuse pad + bf16 cast into one copy.
    if (n, l) == (n_pad, l_pad):
        x_in = x
    else:
        x_in = jnp.zeros((n_pad, l_pad), jnp.bfloat16).at[:n, :l].set(
            x.astype(jnp.bfloat16))

    kernel = _make_kernel(k_steps)
    scratch = [] if k_steps == 1 else [pltpu.VMEM((tn, n_out_pad), jnp.float32)]

    flops = 2 * n_pad * l_pad * n_out_pad + 2 * n_pad * n_out_pad * out_pad
    bytes_accessed = (n_pad * l_pad * jnp.dtype(x_in.dtype).itemsize
                      + grid[0] * l_pad * n_out_pad * 2      # w1 re-read per i tile
                      + n_out_pad * out_pad * 2
                      + (n_out_pad + out_pad) * 4
                      + n_pad * out_pad * out_bytes)

    out_shape = jax.ShapeDtypeStruct((n_pad, out_pad), out_dtype)
    out_spec = pl.BlockSpec((tn, out_pad), lambda i, k: (i, 0))
    compiler_params = pltpu.CompilerParams(
        dimension_semantics=("parallel", "arbitrary"),
        vmem_limit_bytes=vmem_limit)
    cost = pl.CostEstimate(flops=flops, transcendentals=0,
                           bytes_accessed=bytes_accessed)

    # TODO(synk): for very large out_neurons (>~16k) on v7x, stream w2 column
    # blocks from HBM (memory_space=pl.ANY + manual double-buffered DMA) in the
    # epilogue instead of keeping it resident.

    out = None
    last_err = None
    for single_buffer_resident in (True, False):
        try:
            out = pl.pallas_call(
                kernel,
                out_shape=out_shape,
                grid_spec=pltpu.PrefetchScalarGridSpec(
                    num_scalar_prefetch=0,
                    grid=grid,
                    in_specs=_build_in_specs(tn, tk, n_out_pad, out_pad,
                                             single_buffer_resident),
                    out_specs=out_spec,
                    scratch_shapes=scratch,
                ),
                compiler_params=compiler_params,
                cost_estimate=cost,
            )(x_in, p["w1"], p["b1"], p["w2"], p["b2"])
            break
        except Exception as err:   # pl.Buffered(1) unsupported -> default buffering
            last_err = err
    if out is None:
        raise last_err

    # Padded rows are <= 25% of N by construction, so this slice is cheap.
    return out[:n, :p["out_neurons"]]


def speaker_encoder_forward(data, prepared):
    """Mirrors SpeakerEncoder.forward(data, label=None) with features='raw',
    include_top=True."""
    # data = data.reshape(-1, data.size()[-1]).unsqueeze(0)
    last = data.shape[-1]
    flat = data.reshape(-1, last)          # (N, L)
    stacked_in = flat[None, ...]           # (1, N, L)

    feats = []
    for i in range(stacked_in.shape[0]):   # loop over dim 0 (size 1)
        inp = stacked_in[i]
        # features == 'raw' -> compute_features skipped
        # TODO(synk): backbone __S__ is an importlib-loaded SpeakerNetModel;
        # it is represented here by the synthetic linear projection (w1, b1).
        feats.append(_fused_projection(inp, prepared))

    # feat = torch.stack(feat, dim=1).squeeze()
    feat = jnp.stack(feats, axis=1)        # (N, 1, out_neurons)
    # NOTE: like torch.squeeze, this also collapses N when N == 1 (shape hazard).
    feat = jnp.squeeze(feat)               # (N, out_neurons) for N > 1
    return feat


def init_params(key, seq_len, n_out, out_neurons):
    k1, k2, k3, k4 = jax.random.split(key, 4)
    # Backbone (synthetic __S__) linear, stored (in, out) for the kernel.
    w1 = jax.random.normal(k1, (seq_len, n_out), jnp.float32) * 0.05
    b1 = jax.random.normal(k2, (1, n_out), jnp.float32) * 0.05
    # fc = nn.Linear(classifier['input_size']=n_out, classifier['out_neurons'])
    w2 = jax.random.normal(k3, (n_out, out_neurons), jnp.float32) * 0.05
    b2 = jax.random.normal(k4, (1, out_neurons), jnp.float32) * 0.05
    return w1, b1, w2, b2


if __name__ == "__main__":
    key = jax.random.PRNGKey(0)

    # Small synthetic shapes consistent with the forward:
    batch = 2
    n_per_speaker = 2
    seq_len = 32          # raw-sample length (last dim of `data`)
    n_out = 64            # model['nOut'] == classifier['input_size']
    out_neurons = 16      # classifier['out_neurons']

    k_data, k_params = jax.random.split(key)
    data = jax.random.normal(k_data, (batch, n_per_speaker, seq_len), jnp.float32)
    params = init_params(k_params, seq_len, n_out, out_neurons)
    prepared = prepare_params(params)      # hoisted: pad + bf16 cast ONCE

    feat = speaker_encoder_forward(data, prepared)
    feat = jax.block_until_ready(feat)

    assert feat.shape == (batch * n_per_speaker, out_neurons), feat.shape

    # Reference in plain JAX with the same bf16 *operand* rounding the kernel
    # uses; all accumulation and the epilogue (h) stay f32 in both.
    w1, b1, w2, b2 = params
    _bf = lambda a: a.astype(jnp.bfloat16).astype(jnp.float32)
    xf = data.reshape(-1, seq_len)
    h_ref = _bf(xf) @ _bf(w1) + b1
    ref = h_ref @ _bf(w2) + b2
    assert jnp.allclose(feat, ref, atol=5e-3, rtol=5e-3), (
        jnp.max(jnp.abs(feat - ref)))

    print("KERNEL_OK")
</pallas_src>

<mosaic_0001>
module attributes {stable_mosaic.version = 11 : i64} {
  func.func @kernel(%arg0: i32, %arg1: i32, %arg2: memref<16x128xbf16, #tpu.memory_space<vmem>>, %arg3: memref<128x128xbf16, #tpu.memory_space<vmem>>, %arg4: memref<1x128xf32, #tpu.memory_space<vmem>>, %arg5: memref<128x128xbf16, #tpu.memory_space<vmem>>, %arg6: memref<1x128xf32, #tpu.memory_space<vmem>>, %arg7: memref<16x128xf32, #tpu.memory_space<vmem>>) attributes {dimension_semantics = [#tpu.dimension_semantics<parallel>, #tpu.dimension_semantics<arbitrary>], iteration_bounds = array<i64: 1, 1>, scalar_prefetch = 0 : i64, scratch_operands = 0 : i64, tpu.core_type = #tpu.core_type<tc>, window_params = [{transform_indices = @transform_0, window_bounds = array<i64: 16, 128>}, {transform_indices = @transform_1, window_bounds = array<i64: 128, 128>}, {pipeline_mode = #tpu.pipeline_mode<synchronous>, transform_indices = @transform_2, window_bounds = array<i64: 1, 128>}, {pipeline_mode = #tpu.pipeline_mode<synchronous>, transform_indices = @transform_3, window_bounds = array<i64: 128, 128>}, {pipeline_mode = #tpu.pipeline_mode<synchronous>, transform_indices = @transform_4, window_bounds = array<i64: 1, 128>}, {transform_indices = @transform_5, window_bounds = array<i64: 16, 128>}]} {
    %c0 = arith.constant 0 : index
    %c0_0 = arith.constant 0 : index
    %0 = vector.load %arg2[%c0, %c0_0] : memref<16x128xbf16, #tpu.memory_space<vmem>>, vector<16x128xbf16>
    %c0_1 = arith.constant 0 : index
    %c0_2 = arith.constant 0 : index
    %1 = vector.load %arg3[%c0_1, %c0_2] : memref<128x128xbf16, #tpu.memory_space<vmem>>, vector<128x128xbf16>
    %cst = arith.constant dense<0.000000e+00> : vector<16x128xf32>
    %2 = tpu.matmul %0, %1, %cst {dimension_numbers = #tpu.dot_dimension_numbers<[1], [0], [0], [1], [0, 0, 1, 1], [], []>} : vector<16x128xbf16>, vector<128x128xbf16>, vector<16x128xf32> -> vector<16x128xf32>
    %c0_3 = arith.constant 0 : index
    %c0_4 = arith.constant 0 : index
    %3 = vector.load %arg4[%c0_3, %c0_4] : memref<1x128xf32, #tpu.memory_space<vmem>>, vector<1x128xf32>
    %4 = vector.broadcast %3 : vector<1x128xf32> to vector<16x128xf32>
    %5 = arith.addf %2, %4 : vector<16x128xf32>
    %c0_5 = arith.constant 0 : index
    %c0_6 = arith.constant 0 : index
    %6 = vector.load %arg5[%c0_5, %c0_6] : memref<128x128xbf16, #tpu.memory_space<vmem>>, vector<128x128xbf16>
    %7 = arith.extf %6 : vector<128x128xbf16> to vector<128x128xf32>
    %cst_7 = arith.constant dense<0.000000e+00> : vector<16x128xf32>
    %8 = tpu.matmul %5, %7, %cst_7 {dimension_numbers = #tpu.dot_dimension_numbers<[1], [0], [0], [1], [0, 0, 1, 1], [], []>} : vector<16x128xf32>, vector<128x128xf32>, vector<16x128xf32> -> vector<16x128xf32>
    %c0_8 = arith.constant 0 : index
    %c0_9 = arith.constant 0 : index
    %9 = vector.load %arg6[%c0_8, %c0_9] : memref<1x128xf32, #tpu.memory_space<vmem>>, vector<1x128xf32>
    %10 = vector.broadcast %9 : vector<1x128xf32> to vector<16x128xf32>
    %11 = arith.addf %8, %10 : vector<16x128xf32>
    %c0_10 = arith.constant 0 : index
    %c0_11 = arith.constant 0 : index
    %12 = vector.load %arg7[%c0_10, %c0_11] : memref<16x128xf32, #tpu.memory_space<vmem>>, vector<16x128xf32>
    tpu.vector_store %arg7[%c0_10, %c0_11], %11 {strides = array<i32>} : memref<16x128xf32, #tpu.memory_space<vmem>>, vector<16x128xf32>,
    return
  }
  func.func @transform_0(%arg0: i32, %arg1: i32) -> (i32, i32) {
    %c0_i32 = arith.constant 0 : i32
    return %arg0, %arg1 : i32, i32
  }
  func.func @transform_1(%arg0: i32, %arg1: i32) -> (i32, i32) {
    %c0_i32 = arith.constant 0 : i32
    %c0_i32_0 = arith.constant 0 : i32
    return %arg1, %c0_i32 : i32, i32
  }
  func.func @transform_2(%arg0: i32, %arg1: i32) -> (i32, i32) {
    %c0_i32 = arith.constant 0 : i32
    %c0_i32_0 = arith.constant 0 : i32
    %c0_i32_1 = arith.constant 0 : i32
    return %c0_i32, %c0_i32_0 : i32, i32
  }
  func.func @transform_3(%arg0: i32, %arg1: i32) -> (i32, i32) {
    %c0_i32 = arith.constant 0 : i32
    %c0_i32_0 = arith.constant 0 : i32
    %c0_i32_1 = arith.constant 0 : i32
    return %c0_i32, %c0_i32_0 : i32, i32
  }
  func.func @transform_4(%arg0: i32, %arg1: i32) -> (i32, i32) {
    %c0_i32 = arith.constant 0 : i32
    %c0_i32_0 = arith.constant 0 : i32
    %c0_i32_1 = arith.constant 0 : i32
    return %c0_i32, %c0_i32_0 : i32, i32
  }
  func.func @transform_5(%arg0: i32, %arg1: i32) -> (i32, i32) {
    %c0_i32 = arith.constant 0 : i32
    %c0_i32_0 = arith.constant 0 : i32
    return %arg0, %c0_i32 : i32, i32
  }
}

module attributes {stable_mosaic.version = 11 : i64} {
  func.func @kernel(%arg0: i32, %arg1: i32, %arg2: memref<16x128xbf16, #tpu.memory_space<vmem>>, %arg3: memref<128x128xbf16, #tpu.memory_space<vmem>>, %arg4: memref<1x128xf32, #tpu.memory_space<vmem>>, %arg5: memref<128x128xbf16, #tpu.memory_space<vmem>>, %arg6: memref<1x128xf32, #tpu.memory_space<vmem>>, %arg7: memref<16x128xf32, #tpu.memory_space<vmem>>) attributes {dimension_semantics = [#tpu.dimension_semantics<parallel>, #tpu.dimension_semantics<arbitrary>], iteration_bounds = array<i64: 1, 1>, scalar_prefetch = 0 : i64, scratch_operands = 0 : i64, tpu.core_type = #tpu.core_type<tc>, window_params = [{transform_indices = @transform_0, window_bounds = array<i64: 16, 128>}, {transform_indices = @transform_1, window_bounds = array<i64: 128, 128>}, {pipeline_mode = #tpu.pipeline_mode<synchronous>, transform_indices = @transform_2, window_bounds = array<i64: 1, 128>}, {pipeline_mode = #tpu.pipeline_mode<synchronous>, transform_indices = @transform_3, window_bounds = array<i64: 128, 128>}, {pipeline_mode = #tpu.pipeline_mode<synchronous>, transform_indices = @transform_4, window_bounds = array<i64: 1, 128>}, {transform_indices = @transform_5, window_bounds = array<i64: 16, 128>}]} {
    %c0 = arith.constant 0 : index
    %c0_0 = arith.constant 0 : index
    %0 = vector.load %arg2[%c0, %c0_0] : memref<16x128xbf16, #tpu.memory_space<vmem>>, vector<16x128xbf16>
    %c0_1 = arith.constant 0 : index
    %c0_2 = arith.constant 0 : index
    %1 = vector.load %arg3[%c0_1, %c0_2] : memref<128x128xbf16, #tpu.memory_space<vmem>>, vector<128x128xbf16>
    %cst = arith.constant dense<0.000000e+00> : vector<16x128xf32>
    %2 = tpu.matmul %0, %1, %cst {dimension_numbers = #tpu.dot_dimension_numbers<[1], [0], [0], [1], [0, 0, 1, 1], [], []>} : vector<16x128xbf16>, vector<128x128xbf16>, vector<16x128xf32> -> vector<16x128xf32>
    %c0_3 = arith.constant 0 : index
    %c0_4 = arith.constant 0 : index
    %3 = vector.load %arg4[%c0_3, %c0_4] : memref<1x128xf32, #tpu.memory_space<vmem>>, vector<1x128xf32>
    %4 = vector.broadcast %3 : vector<1x128xf32> to vector<16x128xf32>
    %5 = arith.addf %2, %4 : vector<16x128xf32>
    %c0_5 = arith.constant 0 : index
    %c0_6 = arith.constant 0 : index
    %6 = vector.load %arg5[%c0_5, %c0_6] : memref<128x128xbf16, #tpu.memory_space<vmem>>, vector<128x128xbf16>
    %7 = arith.extf %6 : vector<128x128xbf16> to vector<128x128xf32>
    %cst_7 = arith.constant dense<0.000000e+00> : vector<16x128xf32>
    %8 = tpu.matmul %5, %7, %cst_7 {dimension_numbers = #tpu.dot_dimension_numbers<[1], [0], [0], [1], [0, 0, 1, 1], [], []>} : vector<16x128xf32>, vector<128x128xf32>, vector<16x128xf32> -> vector<16x128xf32>
    %c0_8 = arith.constant 0 : index
    %c0_9 = arith.constant 0 : index
    %9 = vector.load %arg6[%c0_8, %c0_9] : memref<1x128xf32, #tpu.memory_space<vmem>>, vector<1x128xf32>
    %10 = vector.broadcast %9 : vector<1x128xf32> to vector<16x128xf32>
    %11 = arith.addf %8, %10 : vector<16x128xf32>
    %c0_10 = arith.constant 0 : index
    %c0_11 = arith.constant 0 : index
    %12 = vector.load %arg7[%c0_10, %c0_11] : memref<16x128xf32, #tpu.memory_space<vmem>>, vector<16x128xf32>
    tpu.vector_store %arg7[%c0_10, %c0_11], %11 {strides = array<i32>} : memref<16x128xf32, #tpu.memory_space<vmem>>, vector<16x128xf32>,
    return
  }
  func.func @transform_0(%arg0: i32, %arg1: i32) -> (i32, i32) {
    %c0_i32 = arith.constant 0 : i32
    return %arg0, %arg1 : i32, i32
  }
  func.func @transform_1(%arg0: i32, %arg1: i32) -> (i32, i32) {
    %c0_i32 = arith.constant 0 : i32
    %c0_i32_0 = arith.constant 0 : i32
    return %arg1, %c0_i32 : i32, i32
  }
  func.func @transform_2(%arg0: i32, %arg1: i32) -> (i32, i32) {
    %c0_i32 = arith.constant 0 : i32
    %c0_i32_0 = arith.constant 0 : i32
    %c0_i32_1 = arith.constant 0 : i32
    return %c0_i32, %c0_i32_0 : i32, i32
  }
  func.func @transform_3(%arg0: i32, %arg1: i32) -> (i32, i32) {
    %c0_i32 = arith.constant 0 : i32
    %c0_i32_0 = arith.constant 0 : i32
    %c0_i32_1 = arith.constant 0 : i32
    return %c0_i32, %c0_i32_0 : i32, i32
  }
  func.func @transform_4(%arg0: i32, %arg1: i32) -> (i32, i32) {
    %c0_i32 = arith.constant 0 : i32
    %c0_i32_0 = arith.constant 0 : i32
    %c0_i32_1 = arith.constant 0 : i32
    return %c0_i32, %c0_i32_0 : i32, i32
  }
  func.func @transform_5(%arg0: i32, %arg1: i32) -> (i32, i32) {
    %c0_i32 = arith.constant 0 : i32
    %c0_i32_0 = arith.constant 0 : i32
    return %arg0, %c0_i32 : i32, i32
  }
}

</mosaic_0001>

<bundles_post_ra>
// kernel: tpu_custom_call.1
= control target key start
LH: loop header
LB: loop body
LE: loop exit
PB: predicated region body
PF: predicated region fallthrough
CT: control target
= control target key end

     0   :  { %10 = vsyncpa [#allocation3], 0  ;;  %s704_s0 = inlined_call_operand.hbm [shape: bf16[16,128], index: 0, kind: input, shape index: {}]   ;;  %s705_s1 = inlined_call_operand.hbm [shape: bf16[128,128], index: 1, kind: input, shape index: {}]   ;;  %s706_s2 = inlined_call_operand.vmem [shape: f32[1,128], index: 2, kind: input, shape index: {}]   ;;  %s707_s3 = inlined_call_operand.hbm [shape: bf16[128,128], index: 3, kind: input, shape index: {}]   ;;  %s708_s4 = inlined_call_operand.vmem [shape: f32[1,128], index: 4, kind: input, shape index: {}]   ;;  %s709_s5 = inlined_call_operand.hbm [shape: f32[16,128], index: 5, kind: output, shape index: {}]  }
   0x1   :  { %11 = vsyncpa [#allocation6], 0 }
   0x2   :  { %12 = vsyncpa [#allocation4], 0  ;;  %s594_s18 = smov [#allocation5]   ;;  %s595_s20 = smov [#allocation2]  }
   0x3   :  { %s30_s19 = sshll.u32 %s594_s18, 4  ;;  %s18_s21 = sshll.u32 %s595_s20, 4  ;;  %s31_s19 = int_to_ptr.vmem [resolvable:$true] %s30_s19  ;;  %s634_s21 = int_to_ptr.vmem [resolvable:$true] %s18_s21 }
   0x4   :  { %s500_s24 = scalar_lea.hbm %s705_s1, 1024 }
   0x5   :  { %p501_p0 = scmp.ne.s32.totalorder %s705_s1, %s500_s24  ;;  %p504_p1 = scmp.lt.u32.totalorder %s500_s24, %s705_s1 }
   0x7   :  { %p506_p2 = pnand %p504_p1, %p501_p0 }
   0x9   :  { %509 = shalt.err (!%p506_p2)
}
   0xa   :  { %s510_s29 = scalar_lea.vmem %s31_s19, 1024  ;;  %p515_p4 = scmp.lt.s32.totalorder %s31_s19, %s31_s19 }
   0xb   :  { %p511_p3 = scmp.ne.s32.totalorder %s31_s19, %s510_s29  ;;  %p516_p5 = scmp.lt.s32.totalorder %s510_s29, %s510_s29 }
   0xd   :  { %p517_p6 = por %p516_p5, %p515_p4 }
   0xf   :  { %p518_p7 = pnand %p517_p6, %p511_p3 }
  0x11   :  { %521 = shalt.err (!%p518_p7)
}
  0x12   :  { %s596_s30 = smov 64   ;;  %s597_s6 = smov 4  }
  0x13   :  { %36 = dma.hbm_to_vmem [thread:$0]  %s705_s1, 1024, %s31_s19, [#allocation6], %s596_s30, %s596_s30, %s597_s6  }
  0x14   :  { %s522_s11 = scalar_lea.hbm %s704_s0, 128 }
  0x15   :  { %p523_p8 = scmp.ne.s32.totalorder %s704_s0, %s522_s11  ;;  %p526_p9 = scmp.lt.u32.totalorder %s522_s11, %s704_s0 }
  0x17   :  { %p528_p10 = pnand %p526_p9, %p523_p8 }
  0x19   :  { %531 = shalt.err (!%p528_p10)
}
  0x1a   :  { %s532_s16 = scalar_lea.vmem %s634_s21, 128  ;;  %p537_p12 = scmp.lt.s32.totalorder %s634_s21, %s634_s21 }
  0x1b   :  { %p533_p11 = scmp.ne.s32.totalorder %s634_s21, %s532_s16  ;;  %p538_p13 = scmp.lt.s32.totalorder %s532_s16, %s532_s16 }
  0x1d   :  { %p539_p0 = por %p538_p13, %p537_p12 }
  0x1f   :  { %p540_p1 = pnand %p539_p0, %p533_p11 }
  0x21   :  { %543 = shalt.err (!%p540_p1)
}
  0x22   :  { %24 = dma.hbm_to_vmem [thread:$0]  %s704_s0, 128, %s634_s21, [#allocation3], %s596_s30, %s596_s30, %s597_s6  }
  0x23   :  { %s598_s18 = smov [#allocation7]   ;;  %s544_s23 = scalar_lea.hbm %s707_s3, 1024 }
  0x24   :  { %s44_s19 = sshll.u32 %s598_s18, 4  ;;  %p545_p2 = scmp.ne.s32.totalorder %s707_s3, %s544_s23  ;;  %s45_s19 = int_to_ptr.vmem [resolvable:$true] %s44_s19 }
  0x25   :  { %p548_p3 = scmp.lt.u32.totalorder %s544_s23, %s707_s3 }
  0x27   :  { %p550_p4 = pnand %p548_p3, %p545_p2 }
  0x29   :  { %553 = shalt.err (!%p550_p4)
}
  0x2a   :  { %s554_s28 = scalar_lea.vmem %s45_s19, 1024  ;;  %p559_p6 = scmp.lt.s32.totalorder %s45_s19, %s45_s19 }
  0x2b   :  { %p555_p5 = scmp.ne.s32.totalorder %s45_s19, %s554_s28  ;;  %p560_p7 = scmp.lt.s32.totalorder %s554_s28, %s554_s28 }
  0x2d   :  { %p561_p8 = por %p560_p7, %p559_p6 }
  0x2f   :  { %p562_p9 = pnand %p561_p8, %p555_p5 }
  0x31   :  { %565 = shalt.err (!%p562_p9)
}
  0x32   :  { %50 = dma.hbm_to_vmem [thread:$0]  %s707_s3, 1024, %s45_s19, [#allocation6], %s596_s30, %s596_s30, %s597_s6  }
  0x33   :  { %588 = dma.done.wait [#allocation3], 128  }
  0x34   :  { %589 = vsyncadd [#allocation3], 4294967168 }
  0x35   :  { %590 = dma.done.wait [#allocation6], 2048  }
  0x36   :  { %591 = vsyncadd [#allocation6], 4294965248  ;;  %v599_v0 = vmov 0.0   ;;  %vm600_vm0 = vmmov 0   ;;  %v491_v1 = vld [vmem:[#allocation5] sm:$0xff]   ;;  %v492_v2 = vld [vmem:[#allocation5 + $0x8] sm:$0xff]  }
  0x37   :  { %394 = vmatprep.subr.bf16.mxu0 %v599_v0  ;;  %410 = vmatprep.mubr.msk.bf16.mxu0 %vm600_vm0, %v599_v0  ;;  %v493_v3 = vld [vmem:[#allocation5 + $0x10] sm:$0xff]   ;;  %v329_v4 = vld [vmem:[#allocation7] sm:$0xff]   ;;  %v360_v5 = vld [vmem:[#allocation7 + $0x8] sm:$0xff]   ;;  %s601_s7 = smov [#allocation8]  }
  0x38   :  { %395 = vmatpush3.bf16.msra.mxu0 %v491_v1  ;;  %v494_v6 = vld [vmem:[#allocation5 + $0x18] sm:$0xff]   ;;  %450 = vmatprep.subr.bf16.mxu1 %v329_v4  ;;  %v361_v7 = vld [vmem:[#allocation7 + $0x10] sm:$0xff]   ;;  %v495_v8 = vld [vmem:[#allocation5 + $0x20] sm:$0xff]   ;;  %s304_s8 = sshll.u32 %s601_s7, 4  ;;  %s305_s8 = int_to_ptr.vmem [resolvable:$true] %s304_s8 }
  0x39   :  { %396 = vmatprep.subr.bf16.mxu0 %v599_v0  ;;  %452 = vmatpush3.bf16.msra.mxu1 %v329_v4  ;;  %v362_v9 = vld [vmem:[#allocation7 + $0x18] sm:$0xff]   ;;  %v496_v10 = vld [vmem:[#allocation5 + $0x28] sm:$0xff]   ;;  %v363_v11 = vld [vmem:[#allocation7 + $0x20] sm:$0xff]   ;;  %p571_p11 = scmp.lt.s32.totalorder %s305_s8, %s305_s8 }
  0x3a   :  { %454 = vmatprep.subr.bf16.mxu1 %v360_v5  ;;  %v497_v12 = vld [vmem:[#allocation5 + $0x30] sm:$0xff]   ;;  %v364_v13 = vld [vmem:[#allocation7 + $0x28] sm:$0xff]   ;;  %v498_v14 = vld [vmem:[#allocation5 + $0x38] sm:$0xff]  }
  0x3b   :  { %v499_v15 = vld [vmem:[#allocation2] sm:$0xff]   ;;  %v365_v16 = vld [vmem:[#allocation7 + $0x30] sm:$0xff]  }
  0x3c   :  { %397 = vmatpush3.bf16.msra.mxu0 %v492_v2  ;;  %v366_v17 = vld [vmem:[#allocation7 + $0x38] sm:$0xff]  }
  0x3d   :  { %398 = vmatprep.subr.bf16.mxu0 %v599_v0  ;;  %456 = vmatpush3.bf16.msra.mxu1 %v360_v5  ;;  %v317_v18 = vld [vmem:[%s706_s2] ss:$0 sm:$0xff]  ;;  %s566_s2 = scalar_lea.vmem %s305_s8, 256 }
  0x3e   :  { %458 = vmatprep.subr.bf16.mxu1 %v361_v7  ;;  %v327_v25 = vld [vmem:[%s708_s4] ss:$0 sm:$0xff]  ;;  %p567_p10 = scmp.ne.s32.totalorder %s305_s8, %s566_s2  ;;  %p572_p12 = scmp.lt.s32.totalorder %s566_s2, %s566_s2 }
  0x40   :  { %399 = vmatpush3.bf16.msra.mxu0 %v493_v3  ;;  %p573_p13 = por %p572_p12, %p571_p11 }
  0x41   :  { %400 = vmatprep.subr.bf16.mxu0 %v599_v0  ;;  %460 = vmatpush3.bf16.msra.mxu1 %v361_v7 }
  0x42   :  { %462 = vmatprep.subr.bf16.mxu1 %v362_v9  ;;  %p574_p0 = pnand %p573_p13, %p567_p10 }
  0x44   :  { %401 = vmatpush3.bf16.msra.mxu0 %v494_v6 }
  0x45   :  { %402 = vmatprep.subr.bf16.mxu0 %v599_v0  ;;  %464 = vmatpush3.bf16.msra.mxu1 %v362_v9 }
  0x46   :  { %466 = vmatprep.subr.bf16.mxu1 %v363_v11 }
  0x48   :  { %403 = vmatpush3.bf16.msra.mxu0 %v495_v8 }
  0x49   :  { %404 = vmatprep.subr.bf16.mxu0 %v599_v0  ;;  %468 = vmatpush3.bf16.msra.mxu1 %v363_v11 }
  0x4a   :  { %470 = vmatprep.subr.bf16.mxu1 %v364_v13 }
  0x4c   :  { %405 = vmatpush3.bf16.msra.mxu0 %v496_v10 }
  0x4d   :  { %406 = vmatprep.subr.bf16.mxu0 %v599_v0  ;;  %472 = vmatpush3.bf16.msra.mxu1 %v364_v13 }
  0x4e   :  { %474 = vmatprep.subr.bf16.mxu1 %v365_v16 }
  0x50   :  { %407 = vmatpush3.bf16.msra.mxu0 %v497_v12 }
  0x51   :  { %408 = vmatprep.subr.bf16.mxu0 %v599_v0  ;;  %476 = vmatpush3.bf16.msra.mxu1 %v365_v16 }
  0x52   :  { %478 = vmatprep.subr.bf16.mxu1 %v366_v17 }
  0x54   :  { %409 = vmatpush3.bf16.msra.mxu0 %v498_v14 }
  0x55   :  { %480 = vmatpush3.bf16.msra.mxu1 %v366_v17 }
  0x57   :  { %411 = vmatmul.mubr.bf16.vlgmr.msra.gmra.mrb[0].mxu0 %v499_v15 }
 0x12a   :  { %v176_v19 = vpop.f32.mrb[0].mxu0 }
 0x12b   :  { %v412_v20 = vpop.f32.mrb[1].mxu0  ;;  %v177_v21 = vadd.f32 %v317_v18, %v176_v19 }
 0x12c   :  { %v179_v22 = vpop.f32.mrb[2].mxu0 }
 0x12d   :  { %v180_v23 = vadd.f32 %v317_v18, %v179_v22  ;;  %v413_v24 = vpop.f32.mrb[3].mxu0  ;;  %446 = vmatprep.mubr.f32.mxu1 %v177_v21 }
 0x12f   :  { %447 = vmatmul.mubr.f32.vlgmr.msra.gmra.mrb[0].mxu1 %v180_v23 }
 0x202   :  { %v448_v26 = vpop.f32.mrb[0].mxu1 }
 0x203   :  { %v294_v27 = vadd.f32 %v448_v26, %v327_v25  ;;  %v288_v28 = vpop.f32.mrb[1].mxu1 }
 0x204   :  { %v289_v29 = vadd.f32 %v327_v25, %v288_v28 }
 0x205   :  { %298 = vst [vmem:[#allocation8 + $0x8] sm:$0xff] %v294_v27 }
 0x206   :  { %297 = vst [vmem:[#allocation8] sm:$0xff] %v289_v29 }
 0x207   :  { %577 = shalt.err (!%p574_p0)
}
 0x208   :  { %s578_s4 = scalar_lea.hbm %s709_s5, 256 }
 0x209   :  { %p579_p1 = scmp.ne.s32.totalorder %s709_s5, %s578_s4  ;;  %p582_p2 = scmp.lt.u32.totalorder %s578_s4, %s709_s5 }
 0x20b   :  { %p584_p3 = pnand %p582_p2, %p579_p1 }
 0x20d   :  { %587 = shalt.err (!%p584_p3)
}
 0x20e   :  { %s602_s15 = smov 128   ;;  %s603_s16 = smov 8  }
 0x20f   :  { %310 = dma.vmem_to_hbm [thread:$0]  %s305_s8, 256, %s709_s5, [#allocation4], %s602_s15, %s602_s15, %s603_s16  }
 0x210   :  { %592 = dma.done.wait [#allocation4], 256  }
 0x211   :  { %593 = vsyncadd [#allocation4], 4294967040 }
 0x212   :  { %314 = vsyncpa [#allocation3], 1 }
 0x213   :  { %315 = vsyncpa [#allocation6], 1 }
 0x214   :  { %316 = vsyncpa [#allocation4], 1 }

// kernel: tpu_custom_call.1
= control target key start
LH: loop header
LB: loop body
LE: loop exit
PB: predicated region body
PF: predicated region fallthrough
CT: control target
= control target key end

     0   :  { %10 = vsyncpa [#allocation3], 0  ;;  %s704_s0 = inlined_call_operand.hbm [shape: bf16[16,128], index: 0, kind: input, shape index: {}]   ;;  %s705_s1 = inlined_call_operand.hbm [shape: bf16[128,128], index: 1, kind: input, shape index: {}]   ;;  %s706_s2 = inlined_call_operand.vmem [shape: f32[1,128], index: 2, kind: input, shape index: {}]   ;;  %s707_s3 = inlined_call_operand.hbm [shape: bf16[128,128], index: 3, kind: input, shape index: {}]   ;;  %s708_s4 = inlined_call_operand.vmem [shape: f32[1,128], index: 4, kind: input, shape index: {}]   ;;  %s709_s5 = inlined_call_operand.hbm [shape: f32[16,128], index: 5, kind: output, shape index: {}]  }
   0x1   :  { %11 = vsyncpa [#allocation6], 0 }
   0x2   :  { %12 = vsyncpa [#allocation4], 0  ;;  %s594_s18 = smov [#allocation5]   ;;  %s595_s20 = smov [#allocation2]  }
   0x3   :  { %s30_s19 = sshll.u32 %s594_s18, 4  ;;  %s18_s21 = sshll.u32 %s595_s20, 4  ;;  %s31_s19 = int_to_ptr.vmem [resolvable:$true] %s30_s19  ;;  %s634_s21 = int_to_ptr.vmem [resolvable:$true] %s18_s21 }
   0x4   :  { %s500_s24 = scalar_lea.hbm %s705_s1, 1024 }
   0x5   :  { %p501_p0 = scmp.ne.s32.totalorder %s705_s1, %s500_s24  ;;  %p504_p1 = scmp.lt.u32.totalorder %s500_s24, %s705_s1 }
   0x7   :  { %p506_p2 = pnand %p504_p1, %p501_p0 }
   0x9   :  { %509 = shalt.err (!%p506_p2)
}
   0xa   :  { %s510_s29 = scalar_lea.vmem %s31_s19, 1024  ;;  %p515_p4 = scmp.lt.s32.totalorder %s31_s19, %s31_s19 }
   0xb   :  { %p511_p3 = scmp.ne.s32.totalorder %s31_s19, %s510_s29  ;;  %p516_p5 = scmp.lt.s32.totalorder %s510_s29, %s510_s29 }
   0xd   :  { %p517_p6 = por %p516_p5, %p515_p4 }
   0xf   :  { %p518_p7 = pnand %p517_p6, %p511_p3 }
  0x11   :  { %521 = shalt.err (!%p518_p7)
}
  0x12   :  { %s596_s30 = smov 64   ;;  %s597_s6 = smov 4  }
  0x13   :  { %36 = dma.hbm_to_vmem [thread:$0]  %s705_s1, 1024, %s31_s19, [#allocation6], %s596_s30, %s596_s30, %s597_s6  }
  0x14   :  { %s522_s11 = scalar_lea.hbm %s704_s0, 128 }
  0x15   :  { %p523_p8 = scmp.ne.s32.totalorder %s704_s0, %s522_s11  ;;  %p526_p9 = scmp.lt.u32.totalorder %s522_s11, %s704_s0 }
  0x17   :  { %p528_p10 = pnand %p526_p9, %p523_p8 }
  0x19   :  { %531 = shalt.err (!%p528_p10)
}
  0x1a   :  { %s532_s16 = scalar_lea.vmem %s634_s21, 128  ;;  %p537_p12 = scmp.lt.s32.totalorder %s634_s21, %s634_s21 }
  0x1b   :  { %p533_p11 = scmp.ne.s32.totalorder %s634_s21, %s532_s16  ;;  %p538_p13 = scmp.lt.s32.totalorder %s532_s16, %s532_s16 }
  0x1d   :  { %p539_p0 = por %p538_p13, %p537_p12 }
  0x1f   :  { %p540_p1 = pnand %p539_p0, %p533_p11 }
  0x21   :  { %543 = shalt.err (!%p540_p1)
}
  0x22   :  { %24 = dma.hbm_to_vmem [thread:$0]  %s704_s0, 128, %s634_s21, [#allocation3], %s596_s30, %s596_s30, %s597_s6  }
  0x23   :  { %s598_s18 = smov [#allocation7]   ;;  %s544_s23 = scalar_lea.hbm %s707_s3, 1024 }
  0x24   :  { %s44_s19 = sshll.u32 %s598_s18, 4  ;;  %p545_p2 = scmp.ne.s32.totalorder %s707_s3, %s544_s23  ;;  %s45_s19 = int_to_ptr.vmem [resolvable:$true] %s44_s19 }
  0x25   :  { %p548_p3 = scmp.lt.u32.totalorder %s544_s23, %s707_s3 }
  0x27   :  { %p550_p4 = pnand %p548_p3, %p545_p2 }
  0x29   :  { %553 = shalt.err (!%p550_p4)
}
  0x2a   :  { %s554_s28 = scalar_lea.vmem %s45_s19, 1024  ;;  %p559_p6 = scmp.lt.s32.totalorder %s45_s19, %s45_s19 }
  0x2b   :  { %p555_p5 = scmp.ne.s32.totalorder %s45_s19, %s554_s28  ;;  %p560_p7 = scmp.lt.s32.totalorder %s554_s28, %s554_s28 }
  0x2d   :  { %p561_p8 = por %p560_p7, %p559_p6 }
  0x2f   :  { %p562_p9 = pnand %p561_p8, %p555_p5 }
  0x31   :  { %565 = shalt.err (!%p562_p9)
}
  0x32   :  { %50 = dma.hbm_to_vmem [thread:$0]  %s707_s3, 1024, %s45_s19, [#allocation6], %s596_s30, %s596_s30, %s597_s6  }
  0x33   :  { %588 = dma.done.wait [#allocation3], 128  }
  0x34   :  { %589 = vsyncadd [#allocation3], 4294967168 }
  0x35   :  { %590 = dma.done.wait [#allocation6], 2048  }
  0x36   :  { %591 = vsyncadd [#allocation6], 4294965248  ;;  %v599_v0 = vmov 0.0   ;;  %vm600_vm0 = vmmov 0   ;;  %v491_v1 = vld [vmem:[#allocation5] sm:$0xff]   ;;  %v492_v2 = vld [vmem:[#allocation5 + $0x8] sm:$0xff]  }
  0x37   :  { %394 = vmatprep.subr.bf16.mxu0 %v599_v0  ;;  %410 = vmatprep.mubr.msk.bf16.mxu0 %vm600_vm0, %v599_v0  ;;  %v493_v3 = vld [vmem:[#allocation5 + $0x10] sm:$0xff]   ;;  %v329_v4 = vld [vmem:[#allocation7] sm:$0xff]   ;;  %v360_v5 = vld [vmem:[#allocation7 + $0x8] sm:$0xff]   ;;  %s601_s7 = smov [#allocation8]  }
  0x38   :  { %395 = vmatpush3.bf16.msra.mxu0 %v491_v1  ;;  %v494_v6 = vld [vmem:[#allocation5 + $0x18] sm:$0xff]   ;;  %450 = vmatprep.subr.bf16.mxu1 %v329_v4  ;;  %v361_v7 = vld [vmem:[#allocation7 + $0x10] sm:$0xff]   ;;  %v495_v8 = vld [vmem:[#allocation5 + $0x20] sm:$0xff]   ;;  %s304_s8 = sshll.u32 %s601_s7, 4  ;;  %s305_s8 = int_to_ptr.vmem [resolvable:$true] %s304_s8 }
  0x39   :  { %396 = vmatprep.subr.bf16.mxu0 %v599_v0  ;;  %452 = vmatpush3.bf16.msra.mxu1 %v329_v4  ;;  %v362_v9 = vld [vmem:[#allocation7 + $0x18] sm:$0xff]   ;;  %v496_v10 = vld [vmem:[#allocation5 + $0x28] sm:$0xff]   ;;  %v363_v11 = vld [vmem:[#allocation7 + $0x20] sm:$0xff]   ;;  %p571_p11 = scmp.lt.s32.totalorder %s305_s8, %s305_s8 }
  0x3a   :  { %454 = vmatprep.subr.bf16.mxu1 %v360_v5  ;;  %v497_v12 = vld [vmem:[#allocation5 + $0x30] sm:$0xff]   ;;  %v364_v13 = vld [vmem:[#allocation7 + $0x28] sm:$0xff]   ;;  %v498_v14 = vld [vmem:[#allocation5 + $0x38] sm:$0xff]  }
  0x3b   :  { %v499_v15 = vld [vmem:[#allocation2] sm:$0xff]   ;;  %v365_v16 = vld [vmem:[#allocation7 + $0x30] sm:$0xff]  }
  0x3c   :  { %397 = vmatpush3.bf16.msra.mxu0 %v492_v2  ;;  %v366_v17 = vld [vmem:[#allocation7 + $0x38] sm:$0xff]  }
  0x3d   :  { %398 = vmatprep.subr.bf16.mxu0 %v599_v0  ;;  %456 = vmatpush3.bf16.msra.mxu1 %v360_v5  ;;  %v317_v18 = vld [vmem:[%s706_s2] ss:$0 sm:$0xff]  ;;  %s566_s2 = scalar_lea.vmem %s305_s8, 256 }
  0x3e   :  { %458 = vmatprep.subr.bf16.mxu1 %v361_v7  ;;  %v327_v25 = vld [vmem:[%s708_s4] ss:$0 sm:$0xff]  ;;  %p567_p10 = scmp.ne.s32.totalorder %s305_s8, %s566_s2  ;;  %p572_p12 = scmp.lt.s32.totalorder %s566_s2, %s566_s2 }
  0x40   :  { %399 = vmatpush3.bf16.msra.mxu0 %v493_v3  ;;  %p573_p13 = por %p572_p12, %p571_p11 }
  0x41   :  { %400 = vmatprep.subr.bf16.mxu0 %v599_v0  ;;  %460 = vmatpush3.bf16.msra.mxu1 %v361_v7 }
  0x42   :  { %462 = vmatprep.subr.bf16.mxu1 %v362_v9  ;;  %p574_p0 = pnand %p573_p13, %p567_p10 }
  0x44   :  { %401 = vmatpush3.bf16.msra.mxu0 %v494_v6 }
  0x45   :  { %402 = vmatprep.subr.bf16.mxu0 %v599_v0  ;;  %464 = vmatpush3.bf16.msra.mxu1 %v362_v9 }
  0x46   :  { %466 = vmatprep.subr.bf16.mxu1 %v363_v11 }
  0x48   :  { %403 = vmatpush3.bf16.msra.mxu0 %v495_v8 }
  0x49   :  { %404 = vmatprep.subr.bf16.mxu0 %v599_v0  ;;  %468 = vmatpush3.bf16.msra.mxu1 %v363_v11 }
  0x4a   :  { %470 = vmatprep.subr.bf16.mxu1 %v364_v13 }
  0x4c   :  { %405 = vmatpush3.bf16.msra.mxu0 %v496_v10 }
  0x4d   :  { %406 = vmatprep.subr.bf16.mxu0 %v599_v0  ;;  %472 = vmatpush3.bf16.msra.mxu1 %v364_v13 }
  0x4e   :  { %474 = vmatprep.subr.bf16.mxu1 %v365_v16 }
  0x50   :  { %407 = vmatpush3.bf16.msra.mxu0 %v497_v12 }
  0x51   :  { %408 = vmatprep.subr.bf16.mxu0 %v599_v0  ;;  %476 = vmatpush3.bf16.msra.mxu1 %v365_v16 }
  0x52   :  { %478 = vmatprep.subr.bf16.mxu1 %v366_v17 }
  0x54   :  { %409 = vmatpush3.bf16.msra.mxu0 %v498_v14 }
  0x55   :  { %480 = vmatpush3.bf16.msra.mxu1 %v366_v17 }
  0x57   :  { %411 = vmatmul.mubr.bf16.vlgmr.msra.gmra.mrb[0].mxu0 %v499_v15 }
 0x12a   :  { %v176_v19 = vpop.f32.mrb[0].mxu0 }
 0x12b   :  { %v412_v20 = vpop.f32.mrb[1].mxu0  ;;  %v177_v21 = vadd.f32 %v317_v18, %v176_v19 }
 0x12c   :  { %v179_v22 = vpop.f32.mrb[2].mxu0 }
 0x12d   :  { %v180_v23 = vadd.f32 %v317_v18, %v179_v22  ;;  %v413_v24 = vpop.f32.mrb[3].mxu0  ;;  %446 = vmatprep.mubr.f32.mxu1 %v177_v21 }
 0x12f   :  { %447 = vmatmul.mubr.f32.vlgmr.msra.gmra.mrb[0].mxu1 %v180_v23 }
 0x202   :  { %v448_v26 = vpop.f32.mrb[0].mxu1 }
 0x203   :  { %v294_v27 = vadd.f32 %v448_v26, %v327_v25  ;;  %v288_v28 = vpop.f32.mrb[1].mxu1 }
 0x204   :  { %v289_v29 = vadd.f32 %v327_v25, %v288_v28 }
 0x205   :  { %298 = vst [vmem:[#allocation8 + $0x8] sm:$0xff] %v294_v27 }
 0x206   :  { %297 = vst [vmem:[#allocation8] sm:$0xff] %v289_v29 }
 0x207   :  { %577 = shalt.err (!%p574_p0)
}
 0x208   :  { %s578_s4 = scalar_lea.hbm %s709_s5, 256 }
 0x209   :  { %p579_p1 = scmp.ne.s32.totalorder %s709_s5, %s578_s4  ;;  %p582_p2 = scmp.lt.u32.totalorder %s578_s4, %s709_s5 }
 0x20b   :  { %p584_p3 = pnand %p582_p2, %p579_p1 }
 0x20d   :  { %587 = shalt.err (!%p584_p3)
}
 0x20e   :  { %s602_s15 = smov 128   ;;  %s603_s16 = smov 8  }
 0x20f   :  { %310 = dma.vmem_to_hbm [thread:$0]  %s305_s8, 256, %s709_s5, [#allocation4], %s602_s15, %s602_s15, %s603_s16  }
 0x210   :  { %592 = dma.done.wait [#allocation4], 256  }
 0x211   :  { %593 = vsyncadd [#allocation4], 4294967040 }
 0x212   :  { %314 = vsyncpa [#allocation3], 1 }
 0x213   :  { %315 = vsyncpa [#allocation6], 1 }
 0x214   :  { %316 = vsyncpa [#allocation4], 1 }

</bundles_post_ra>
